<compile_context>
chip_gen: v7x
topology: tpu7x:2x2x1
jax: 0.10.0
libtpu: 0.0.40
codegen_flags: <defaults>
</compile_context>

<pallas_src>
import functools

import jax
import jax.numpy as jnp
from jax import lax
from jax.experimental import pallas as pl
from jax.experimental.pallas import tpu as pltpu

LANE = 128
SUBLANE_BF16 = 16   # bf16 sublane packing rule
SUBLANE_F32 = 8


def _round_up(v, m):
    return ((v + m - 1) // m) * m


# ---------------------------------------------------------------------------
# Fused Pallas kernel: grid over the two molecules; GCN layers + mean-pool per
# step, cosine head on the final step.
# ---------------------------------------------------------------------------

def _siamese_kernel(a01_ref, dinv_ref, x_ref, w_ref, pool_ref, invcnt_ref,
                    o_ref, emb_sc, *, radius):
    m = pl.program_id(0)

    a01 = a01_ref[...]          # [Nm, Nm] bf16, exact 0/1 (A + I)
    dinv = dinv_ref[...]        # [Nm, 1]  f32, d^{-1/2} (0 on padded nodes)
    h = x_ref[...]              # [Nm, F]  bf16 node features

    # `radius` GCN layers: ReLU(D^-1/2 (A+I) D^-1/2 (H @ W_l)).
    # MXU matmuls in bf16 with f32 accumulation; degree scaling in f32 (VPU).
    for l in range(radius):     # static, unrolled
        s = jnp.dot(h, w_ref[l], preferred_element_type=jnp.float32)      # [Nm, F] f32
        s = (s * dinv).astype(jnp.bfloat16)                                # right D^-1/2
        agg = jnp.dot(a01, s, preferred_element_type=jnp.float32)          # [Nm, F] f32
        h = jnp.maximum(agg * dinv, 0.0).astype(jnp.bfloat16)              # left D^-1/2 + ReLU

    # Global mean pooling: exact 0/1 sum-pool on the MXU, 1/count scaling in f32.
    emb = jnp.dot(pool_ref[...], h, preferred_element_type=jnp.float32) * invcnt_ref[...]

    # Molecule A: stash embeddings in the persistent VMEM scratch.
    @pl.when(m == 0)
    def _():
        emb_sc[...] = emb

    # Molecule B (last grid step): cosine head, torch-parity eps handling.
    @pl.when(m == pl.num_programs(0) - 1)
    def _():
        ea = emb_sc[...]
        eb = emb
        dotp = jnp.sum(ea * eb, axis=1, keepdims=True)
        na2 = jnp.sum(ea * ea, axis=1, keepdims=True)
        nb2 = jnp.sum(eb * eb, axis=1, keepdims=True)
        eps = jnp.float32(1e-8)     # F.cosine_similarity eps, clamped per-norm
        cos = dotp * lax.rsqrt(jnp.maximum(na2, eps * eps) *
                               jnp.maximum(nb2, eps * eps))
        # Lane-dense store (unmasked vst); wrapper reads [:num_graphs, 0].
        o_ref[...] = jnp.broadcast_to(cos, o_ref.shape)


def _vmem_limit_bytes(radius, nm_pad, feat_pad, g_pad):
    bf16, f32 = 2, 4
    per_step = (nm_pad * nm_pad * bf16       # per-molecule A+I block
                + nm_pad * feat_pad * bf16   # per-molecule features
                + g_pad * nm_pad * bf16      # per-molecule pool rows
                + nm_pad * LANE * f32        # dinv (lane-padded)
                + g_pad * LANE * f32)        # invcnt (lane-padded)
    resident = (radius * feat_pad * feat_pad * bf16   # weights (constant index_map)
                + g_pad * feat_pad * f32              # embedding scratch
                + g_pad * LANE * f32)                 # output slab
    need = 2 * per_step + resident                    # inputs double-buffered
    # >=32 MiB raises v5e's 16 MiB scoped default; <=48 MiB leaves headroom under
    # v7x's 64 MiB physical VMEM (v6e has 128 MiB, no constraint at this size).
    return int(min(max(4 * need, 32 << 20), 48 << 20))


def build_siamese_forward(radius, nm_pad, feat_pad, g_pad):
    kernel = functools.partial(_siamese_kernel, radius=radius)

    grid_spec = pltpu.PrefetchScalarGridSpec(
        num_scalar_prefetch=0,
        grid=(2,),  # one step per molecule (exploits block-diagonal structure)
        in_specs=[
            pl.BlockSpec((None, nm_pad, nm_pad), lambda m: (m, 0, 0)),      # A + I (0/1)
            pl.BlockSpec((None, nm_pad, 1), lambda m: (m, 0, 0)),           # d^-1/2 f32
            pl.BlockSpec((None, nm_pad, feat_pad), lambda m: (m, 0, 0)),    # features
            pl.BlockSpec((radius, feat_pad, feat_pad), lambda m: (0, 0, 0)),  # weights, resident
            pl.BlockSpec((None, g_pad, nm_pad), lambda m: (m, 0, 0)),       # 0/1 pool
            pl.BlockSpec((None, g_pad, 1), lambda m: (m, 0, 0)),            # 1/count f32
        ],
        out_specs=pl.BlockSpec((g_pad, LANE), lambda m: (0, 0)),
        scratch_shapes=[pltpu.VMEM((g_pad, feat_pad), jnp.float32)],
    )

    compiler_params = pltpu.CompilerParams(
        # step 1 (molecule B + cosine) depends on step 0's scratch -> "arbitrary".
        dimension_semantics=("arbitrary",),
        vmem_limit_bytes=_vmem_limit_bytes(radius, nm_pad, feat_pad, g_pad),
    )

    @jax.jit
    def forward(a01, dinv, x, w, pool01, invcnt):
        return pl.pallas_call(
            kernel,
            out_shape=jax.ShapeDtypeStruct((g_pad, LANE), jnp.float32),
            grid_spec=grid_spec,
            compiler_params=compiler_params,
        )(a01, dinv, x, w, pool01, invcnt)

    return forward


# ---------------------------------------------------------------------------
# Hoisted graph preprocessing (structure-only; computed once, not in hot path)
# ---------------------------------------------------------------------------

def prepare_inputs(weights, mol_a, mol_b, num_graphs):
    """Per-molecule padded operands for the fused kernel.

    Returns (a01, dinv, x, w, pool01, invcnt, nm_pad, feat_pad, g_pad) where the
    leading axis of size 2 indexes {molecule A, molecule B}.
    """
    n_a, f_in = mol_a["x"].shape
    n_b = mol_b["x"].shape[0]
    radius = len(weights)

    nm_pad = _round_up(max(n_a, n_b, 1), LANE)           # lane / MXU-K dim -> 128
    g_pad = _round_up(max(num_graphs, 1), SUBLANE_BF16)   # bf16 sublane rule
    fdims = [f_in] + [d for wl in weights for d in wl.shape]
    feat_pad = _round_up(max(fdims), LANE)

    def mol_blocks(mol, n):
        src = mol["edge_index"][0]
        dst = mol["edge_index"][1]
        adj = jnp.zeros((n, n), jnp.float32)
        adj = adj.at[src, dst].set(1.0)
        adj = adj.at[dst, src].set(1.0)
        adj = jnp.maximum(adj, jnp.eye(n, dtype=jnp.float32))   # self-loops (idempotent)
        deg = jnp.sum(adj, axis=1)
        dinv = 1.0 / jnp.sqrt(jnp.maximum(deg, 1.0))

        a01 = jnp.zeros((nm_pad, nm_pad), jnp.float32).at[:n, :n].set(adj)
        dvec = jnp.zeros((nm_pad, 1), jnp.float32).at[:n, 0].set(dinv)
        xp = jnp.zeros((nm_pad, feat_pad), jnp.float32).at[:n, :f_in].set(
            mol["x"].astype(jnp.float32))

        onehot = (mol["batch"][None, :] ==
                  jnp.arange(num_graphs, dtype=mol["batch"].dtype)[:, None])
        onehot = onehot.astype(jnp.float32)
        counts = jnp.maximum(jnp.sum(onehot, axis=1, keepdims=True), 1.0)
        p01 = jnp.zeros((g_pad, nm_pad), jnp.float32).at[:num_graphs, :n].set(onehot)
        icnt = jnp.zeros((g_pad, 1), jnp.float32).at[:num_graphs].set(1.0 / counts)
        return a01, dvec, xp, p01, icnt

    blk_a = mol_blocks(mol_a, n_a)
    blk_b = mol_blocks(mol_b, n_b)

    a01 = jnp.stack([blk_a[0], blk_b[0]]).astype(jnp.bfloat16)   # exact 0/1
    dinv = jnp.stack([blk_a[1], blk_b[1]])                       # f32
    x = jnp.stack([blk_a[2], blk_b[2]]).astype(jnp.bfloat16)
    pool01 = jnp.stack([blk_a[3], blk_b[3]]).astype(jnp.bfloat16)  # exact 0/1
    invcnt = jnp.stack([blk_a[4], blk_b[4]])                     # f32

    # Zero-padded stacked layer weights (zero padding is exact through every layer).
    w = jnp.zeros((radius, feat_pad, feat_pad), jnp.float32)
    for l, wl in enumerate(weights):
        w = w.at[l, :wl.shape[0], :wl.shape[1]].set(wl.astype(jnp.float32))
    w = w.astype(jnp.bfloat16)

    return a01, dinv, x, w, pool01, invcnt, nm_pad, feat_pad, g_pad


def reference_forward(a01, dinv, x, w, pool01, invcnt, num_graphs):
    """Pure-f32 reference on the same quantized operands (measures kernel drift)."""
    embs = []
    for m in range(2):
        h = x[m].astype(jnp.float32)
        a = a01[m].astype(jnp.float32)
        d = dinv[m]
        for l in range(w.shape[0]):
            s = (h @ w[l].astype(jnp.float32)) * d
            h = jnp.maximum((a @ s) * d, 0.0)
        embs.append((pool01[m].astype(jnp.float32) @ h) * invcnt[m])
    ea, eb = embs
    dotp = jnp.sum(ea * eb, axis=1)
    na = jnp.sqrt(jnp.sum(ea * ea, axis=1))
    nb = jnp.sqrt(jnp.sum(eb * eb, axis=1))
    eps = 1e-8
    return (dotp / (jnp.maximum(na, eps) * jnp.maximum(nb, eps)))[:num_graphs]


# ---------------------------------------------------------------------------
# Deterministic setup + smoke test
# ---------------------------------------------------------------------------

def make_ring_molecule(key, num_graphs, nodes_per_graph, feat_dim):
    """Batched molecule: `num_graphs` ring graphs of `nodes_per_graph` nodes each."""
    n = num_graphs * nodes_per_graph
    x = jax.random.normal(key, (n, feat_dim), jnp.float32)
    srcs, dsts = [], []
    for g in range(num_graphs):
        base = g * nodes_per_graph
        for i in range(nodes_per_graph):
            srcs.append(base + i)
            dsts.append(base + (i + 1) % nodes_per_graph)
    edge_index = jnp.array([srcs, dsts], dtype=jnp.int32)
    batch = jnp.repeat(jnp.arange(num_graphs, dtype=jnp.int32), nodes_per_graph)
    return {"x": x, "edge_index": edge_index, "batch": batch}


if __name__ == "__main__":
    # config for the synthetic gan_model
    config = {"hidden_size": 32, "n_heads": 4, "radius": 2, "embedding_size": 32}

    num_graphs = 2          # graphs per batched molecule
    nodes_per_graph = 8     # -> 16 nodes per molecule
    feat_dim = config["hidden_size"]

    key = jax.random.PRNGKey(0)
    k_w, k_ma, k_mb = jax.random.split(key, 3)

    # GNN layer weights: layer 0 maps feat_dim -> hidden, last layer -> embedding_size.
    dims = ([feat_dim] + [config["hidden_size"]] * (config["radius"] - 1)
            + [config["embedding_size"]])
    wkeys = jax.random.split(k_w, config["radius"])
    weights = [
        (jax.random.normal(wkeys[i], (dims[i], dims[i + 1]), jnp.float32)
         / jnp.sqrt(jnp.float32(dims[i])))
        for i in range(config["radius"])
    ]

    molecule_A = make_ring_molecule(k_ma, num_graphs, nodes_per_graph, feat_dim)
    molecule_B = make_ring_molecule(k_mb, num_graphs, nodes_per_graph, feat_dim)

    # Hoisted preprocessing (structure-dependent, not part of the hot kernel path).
    a01, dinv, x, w, pool01, invcnt, nm_pad, feat_pad, g_pad = prepare_inputs(
        weights, molecule_A, molecule_B, num_graphs)

    forward = build_siamese_forward(config["radius"], nm_pad, feat_pad, g_pad)
    out = jax.block_until_ready(forward(a01, dinv, x, w, pool01, invcnt))
    score = out[:num_graphs, 0]

    # Sanity + cross-check against a pure-f32 JAX reference on identical operands.
    ref = reference_forward(a01, dinv, x, w, pool01, invcnt, num_graphs)
    assert score.shape == (num_graphs,)
    assert bool(jnp.all(jnp.isfinite(score)))
    assert bool(jnp.all(jnp.abs(score) <= 1.0 + 1e-5))
    assert bool(jnp.allclose(score, ref, atol=2e-2)), (score, ref)

    print("KERNEL_OK")
</pallas_src>

<mosaic_0001>
module attributes {stable_mosaic.version = 11 : i64} {
  func.func @_siamese_kernel(%arg0: i32, %arg1: memref<1x128x128xbf16, #tpu.memory_space<vmem>>, %arg2: memref<1x128x1xf32, #tpu.memory_space<vmem>>, %arg3: memref<1x128x128xbf16, #tpu.memory_space<vmem>>, %arg4: memref<2x128x128xbf16, #tpu.memory_space<vmem>>, %arg5: memref<1x16x128xbf16, #tpu.memory_space<vmem>>, %arg6: memref<1x16x1xf32, #tpu.memory_space<vmem>>, %arg7: memref<16x128xf32, #tpu.memory_space<vmem>>, %arg8: memref<16x128xf32, #tpu.memory_space<vmem>>) attributes {dimension_semantics = [#tpu.dimension_semantics<arbitrary>], iteration_bounds = array<i64: 2>, scalar_prefetch = 0 : i64, scratch_operands = 1 : i64, tpu.core_type = #tpu.core_type<tc>, window_params = [{transform_indices = @transform_0, window_bounds = array<i64: 1, 128, 128>}, {transform_indices = @transform_1, window_bounds = array<i64: 1, 128, 1>}, {transform_indices = @transform_2, window_bounds = array<i64: 1, 128, 128>}, {pipeline_mode = #tpu.pipeline_mode<synchronous>, transform_indices = @transform_3, window_bounds = array<i64: 2, 128, 128>}, {transform_indices = @transform_4, window_bounds = array<i64: 1, 16, 128>}, {transform_indices = @transform_5, window_bounds = array<i64: 1, 16, 1>}, {pipeline_mode = #tpu.pipeline_mode<synchronous>, transform_indices = @transform_6, window_bounds = array<i64: 16, 128>}]} {
    %c0 = arith.constant 0 : index
    %c0_0 = arith.constant 0 : index
    %c0_1 = arith.constant 0 : index
    %0 = vector.load %arg1[%c0, %c0_0, %c0_1] : memref<1x128x128xbf16, #tpu.memory_space<vmem>>, vector<1x128x128xbf16>
    %1 = vector.shape_cast %0 : vector<1x128x128xbf16> to vector<128x128xbf16>
    %c0_2 = arith.constant 0 : index
    %c0_3 = arith.constant 0 : index
    %c0_4 = arith.constant 0 : index
    %2 = vector.load %arg2[%c0_2, %c0_3, %c0_4] : memref<1x128x1xf32, #tpu.memory_space<vmem>>, vector<1x128x1xf32>
    %3 = vector.shape_cast %2 : vector<1x128x1xf32> to vector<128x1xf32>
    %c0_5 = arith.constant 0 : index
    %c0_6 = arith.constant 0 : index
    %c0_7 = arith.constant 0 : index
    %4 = vector.load %arg3[%c0_5, %c0_6, %c0_7] : memref<1x128x128xbf16, #tpu.memory_space<vmem>>, vector<1x128x128xbf16>
    %5 = vector.shape_cast %4 : vector<1x128x128xbf16> to vector<128x128xbf16>
    %c0_8 = arith.constant 0 : index
    %c0_9 = arith.constant 0 : index
    %c0_10 = arith.constant 0 : index
    %6 = vector.load %arg4[%c0_8, %c0_9, %c0_10] : memref<2x128x128xbf16, #tpu.memory_space<vmem>>, vector<1x128x128xbf16>
    %7 = vector.shape_cast %6 : vector<1x128x128xbf16> to vector<128x128xbf16>
    %cst = arith.constant dense<0.000000e+00> : vector<128x128xf32>
    %8 = tpu.matmul %5, %7, %cst {dimension_numbers = #tpu.dot_dimension_numbers<[1], [0], [0], [1], [0, 0, 1, 1], [], []>} : vector<128x128xbf16>, vector<128x128xbf16>, vector<128x128xf32> -> vector<128x128xf32>
    %9 = vector.broadcast %3 : vector<128x1xf32> to vector<128x128xf32>
    %10 = arith.mulf %8, %9 : vector<128x128xf32>
    %11 = arith.truncf %10 : vector<128x128xf32> to vector<128x128xbf16>
    %cst_11 = arith.constant dense<0.000000e+00> : vector<128x128xf32>
    %12 = tpu.matmul %1, %11, %cst_11 {dimension_numbers = #tpu.dot_dimension_numbers<[1], [0], [0], [1], [0, 0, 1, 1], [], []>} : vector<128x128xbf16>, vector<128x128xbf16>, vector<128x128xf32> -> vector<128x128xf32>
    %13 = vector.broadcast %3 : vector<128x1xf32> to vector<128x128xf32>
    %14 = arith.mulf %12, %13 : vector<128x128xf32>
    %cst_12 = arith.constant 0.000000e+00 : f32
    %15 = vector.broadcast %cst_12 : f32 to vector<128x128xf32>
    %16 = arith.maximumf %14, %15 : vector<128x128xf32>
    %17 = arith.truncf %16 : vector<128x128xf32> to vector<128x128xbf16>
    %c1 = arith.constant 1 : index
    %c0_13 = arith.constant 0 : index
    %c0_14 = arith.constant 0 : index
    %18 = vector.load %arg4[%c1, %c0_13, %c0_14] : memref<2x128x128xbf16, #tpu.memory_space<vmem>>, vector<1x128x128xbf16>
    %19 = vector.shape_cast %18 : vector<1x128x128xbf16> to vector<128x128xbf16>
    %cst_15 = arith.constant dense<0.000000e+00> : vector<128x128xf32>
    %20 = tpu.matmul %17, %19, %cst_15 {dimension_numbers = #tpu.dot_dimension_numbers<[1], [0], [0], [1], [0, 0, 1, 1], [], []>} : vector<128x128xbf16>, vector<128x128xbf16>, vector<128x128xf32> -> vector<128x128xf32>
    %21 = vector.broadcast %3 : vector<128x1xf32> to vector<128x128xf32>
    %22 = arith.mulf %20, %21 : vector<128x128xf32>
    %23 = arith.truncf %22 : vector<128x128xf32> to vector<128x128xbf16>
    %cst_16 = arith.constant dense<0.000000e+00> : vector<128x128xf32>
    %24 = tpu.matmul %1, %23, %cst_16 {dimension_numbers = #tpu.dot_dimension_numbers<[1], [0], [0], [1], [0, 0, 1, 1], [], []>} : vector<128x128xbf16>, vector<128x128xbf16>, vector<128x128xf32> -> vector<128x128xf32>
    %25 = vector.broadcast %3 : vector<128x1xf32> to vector<128x128xf32>
    %26 = arith.mulf %24, %25 : vector<128x128xf32>
    %cst_17 = arith.constant 0.000000e+00 : f32
    %27 = vector.broadcast %cst_17 : f32 to vector<128x128xf32>
    %28 = arith.maximumf %26, %27 : vector<128x128xf32>
    %29 = arith.truncf %28 : vector<128x128xf32> to vector<128x128xbf16>
    %c0_18 = arith.constant 0 : index
    %c0_19 = arith.constant 0 : index
    %c0_20 = arith.constant 0 : index
    %30 = vector.load %arg5[%c0_18, %c0_19, %c0_20] : memref<1x16x128xbf16, #tpu.memory_space<vmem>>, vector<1x16x128xbf16>
    %31 = vector.shape_cast %30 : vector<1x16x128xbf16> to vector<16x128xbf16>
    %cst_21 = arith.constant dense<0.000000e+00> : vector<16x128xf32>
    %32 = tpu.matmul %31, %29, %cst_21 {dimension_numbers = #tpu.dot_dimension_numbers<[1], [0], [0], [1], [0, 0, 1, 1], [], []>} : vector<16x128xbf16>, vector<128x128xbf16>, vector<16x128xf32> -> vector<16x128xf32>
    %c0_22 = arith.constant 0 : index
    %c0_23 = arith.constant 0 : index
    %c0_24 = arith.constant 0 : index
    %33 = vector.load %arg6[%c0_22, %c0_23, %c0_24] : memref<1x16x1xf32, #tpu.memory_space<vmem>>, vector<1x16x1xf32>
    %34 = vector.shape_cast %33 : vector<1x16x1xf32> to vector<16x1xf32>
    %35 = vector.broadcast %34 : vector<16x1xf32> to vector<16x128xf32>
    %36 = arith.mulf %32, %35 : vector<16x128xf32>
    %c0_i32 = arith.constant 0 : i32
    %37 = arith.cmpi eq, %arg0, %c0_i32 : i32
    %38 = arith.extui %37 : i1 to i32
    %c0_i32_25 = arith.constant 0 : i32
    %39 = arith.cmpi ne, %38, %c0_i32_25 : i32
    scf.if %39 {
      %c0_27 = arith.constant 0 : index
      %c0_28 = arith.constant 0 : index
      %43 = vector.load %arg8[%c0_27, %c0_28] : memref<16x128xf32, #tpu.memory_space<vmem>>, vector<16x128xf32>
      tpu.vector_store %arg8[%c0_27, %c0_28], %36 {strides = array<i32>} : memref<16x128xf32, #tpu.memory_space<vmem>>, vector<16x128xf32>,
    } else {
    }
    %c1_i32 = arith.constant 1 : i32
    %40 = arith.cmpi eq, %arg0, %c1_i32 : i32
    %41 = arith.extui %40 : i1 to i32
    %c0_i32_26 = arith.constant 0 : i32
    %42 = arith.cmpi ne, %41, %c0_i32_26 : i32
    scf.if %42 {
      %c0_27 = arith.constant 0 : index
      %c0_28 = arith.constant 0 : index
      %43 = vector.load %arg8[%c0_27, %c0_28] : memref<16x128xf32, #tpu.memory_space<vmem>>, vector<16x128xf32>
      %44 = arith.mulf %43, %36 : vector<16x128xf32>
      %cst_29 = arith.constant dense<0.000000e+00> : vector<16xf32>
      %45 = vector.multi_reduction <add>, %44, %cst_29 [1] : vector<16x128xf32> to vector<16xf32>
      %46 = vector.shape_cast %45 : vector<16xf32> to vector<16x1xf32>
      %47 = arith.mulf %43, %43 : vector<16x128xf32>
      %cst_30 = arith.constant dense<0.000000e+00> : vector<16xf32>
      %48 = vector.multi_reduction <add>, %47, %cst_30 [1] : vector<16x128xf32> to vector<16xf32>
      %49 = vector.shape_cast %48 : vector<16xf32> to vector<16x1xf32>
      %50 = arith.mulf %36, %36 : vector<16x128xf32>
      %cst_31 = arith.constant dense<0.000000e+00> : vector<16xf32>
      %51 = vector.multi_reduction <add>, %50, %cst_31 [1] : vector<16x128xf32> to vector<16xf32>
      %52 = vector.shape_cast %51 : vector<16xf32> to vector<16x1xf32>
      %cst_32 = arith.constant 9.99999993E-9 : f32
      %cst_33 = arith.constant 9.99999993E-9 : f32
      %53 = arith.mulf %cst_32, %cst_33 : f32
      %54 = vector.broadcast %53 : f32 to vector<16x1xf32>
      %55 = arith.maximumf %49, %54 : vector<16x1xf32>
      %cst_34 = arith.constant 9.99999993E-9 : f32
      %cst_35 = arith.constant 9.99999993E-9 : f32
      %56 = arith.mulf %cst_34, %cst_35 : f32
      %57 = vector.broadcast %56 : f32 to vector<16x1xf32>
      %58 = arith.maximumf %52, %57 : vector<16x1xf32>
      %59 = arith.mulf %55, %58 : vector<16x1xf32>
      %60 = math.rsqrt %59 : vector<16x1xf32>
      %61 = arith.mulf %46, %60 : vector<16x1xf32>
      %62 = vector.shape_cast %61 : vector<16x1xf32> to vector<16x1xf32>
      %63 = vector.broadcast %62 : vector<16x1xf32> to vector<16x128xf32>
      %c0_36 = arith.constant 0 : index
      %c0_37 = arith.constant 0 : index
      %64 = vector.load %arg7[%c0_36, %c0_37] : memref<16x128xf32, #tpu.memory_space<vmem>>, vector<16x128xf32>
      tpu.vector_store %arg7[%c0_36, %c0_37], %63 {strides = array<i32>} : memref<16x128xf32, #tpu.memory_space<vmem>>, vector<16x128xf32>,
    } else {
    }
    return
  }
  func.func @transform_0(%arg0: i32) -> (i32, i32, i32) {
    %c0_i32 = arith.constant 0 : i32
    %c0_i32_0 = arith.constant 0 : i32
    %c0_i32_1 = arith.constant 0 : i32
    return %arg0, %c0_i32, %c0_i32_0 : i32, i32, i32
  }
  func.func @transform_1(%arg0: i32) -> (i32, i32, i32) {
    %c0_i32 = arith.constant 0 : i32
    %c0_i32_0 = arith.constant 0 : i32
    %c0_i32_1 = arith.constant 0 : i32
    return %arg0, %c0_i32, %c0_i32_0 : i32, i32, i32
  }
  func.func @transform_2(%arg0: i32) -> (i32, i32, i32) {
    %c0_i32 = arith.constant 0 : i32
    %c0_i32_0 = arith.constant 0 : i32
    %c0_i32_1 = arith.constant 0 : i32
    return %arg0, %c0_i32, %c0_i32_0 : i32, i32, i32
  }
  func.func @transform_3(%arg0: i32) -> (i32, i32, i32) {
    %c0_i32 = arith.constant 0 : i32
    %c0_i32_0 = arith.constant 0 : i32
    %c0_i32_1 = arith.constant 0 : i32
    %c0_i32_2 = arith.constant 0 : i32
    return %c0_i32, %c0_i32_0, %c0_i32_1 : i32, i32, i32
  }
  func.func @transform_4(%arg0: i32) -> (i32, i32, i32) {
    %c0_i32 = arith.constant 0 : i32
    %c0_i32_0 = arith.constant 0 : i32
    %c0_i32_1 = arith.constant 0 : i32
    return %arg0, %c0_i32, %c0_i32_0 : i32, i32, i32
  }
  func.func @transform_5(%arg0: i32) -> (i32, i32, i32) {
    %c0_i32 = arith.constant 0 : i32
    %c0_i32_0 = arith.constant 0 : i32
    %c0_i32_1 = arith.constant 0 : i32
    return %arg0, %c0_i32, %c0_i32_0 : i32, i32, i32
  }
  func.func @transform_6(%arg0: i32) -> (i32, i32) {
    %c0_i32 = arith.constant 0 : i32
    %c0_i32_0 = arith.constant 0 : i32
    %c0_i32_1 = arith.constant 0 : i32
    return %c0_i32, %c0_i32_0 : i32, i32
  }
}

</mosaic_0001>

<bundles_post_ra>
// kernel: forward.1
= control target key start
LH: loop header
LB: loop body
LE: loop exit
PB: predicated region body
PF: predicated region fallthrough
CT: control target
= control target key end

     0   :  { %11 = vsyncpa [#allocation4], 0  ;;  %s2163_s0 = inlined_call_operand.vmem [shape: bf16[2,128,128], index: 0, kind: input, shape index: {}]   ;;  %s2164_s1 = inlined_call_operand.vmem [shape: f32[2,128,1], index: 1, kind: input, shape index: {}]   ;;  %s2165_s2 = inlined_call_operand.vmem [shape: bf16[2,128,128], index: 2, kind: input, shape index: {}]   ;;  %s2166_s3 = inlined_call_operand.hbm [shape: bf16[2,128,128], index: 3, kind: input, shape index: {}]   ;;  %s2167_s4 = inlined_call_operand.vmem [shape: bf16[2,16,128], index: 4, kind: input, shape index: {}]   ;;  %s2168_s5 = inlined_call_operand.vmem [shape: f32[2,16,1], index: 5, kind: input, shape index: {}]   ;;  %s2169_s6 = inlined_call_operand.hbm [shape: f32[16,128], index: 6, kind: output, shape index: {}]  }
   0x1   :  { %12 = vsyncpa [#allocation5], 0  ;;  %s1883_s21 = smov 0  }
   0x2 LB: > { %s1889_s22 = sadd.s32 4294967295, %s1837_s21   ;;  %p1417_p0 = scmp.ge.s32.totalorder %s1837_s21, 1  ;;  %s1837_s21 = sphi %s1883_s21, %s18_s21  }
   0x3   : > { %p195_p1 = scmp.lt.s32.totalorder %s1837_s21, 3  ;;  %s1839_s23 = smov [#allocation3]  }
   0x4   : > { %s207_s24 = sshll.u32 %s1839_s23, 4  ;;  %p2170_p4 = scmp.eq.s32.totalorder %s1889_s22, 0  ;;  %s208_s24 = int_to_ptr.vmem [resolvable:$true] %s207_s24 }
   0x5   : > { %p1894_p3 = pnand %p1417_p0, %p195_p1  ;;  %s1769_s29 = scalar_lea.hbm %s2166_s3, 2048 }
   0x6   : > { %p1770_p7 = scmp.ne.s32.totalorder %s2166_s3, %s1769_s29  ;;  %p1776_p11 = scmp.lt.u32.totalorder %s1769_s29, %s2166_s3 }
   0x7   : > { %s2172_s25 = scalar_select %p1894_p3, 1, 0 }
   0x8   : > { %p1705_p5 = pneg %p1894_p3 }
   0xa   : > { %p1903_p6 = pnand %p2170_p4, %p1705_p5 }
   0xc   : > { %p1771_p8 = pneg %p1903_p6 }
   0xe   : > { %p1772_p9 = pnand %p1771_p8, %p1770_p7 }
  0x10   : > { %p1773_p10 = pneg %p1772_p9 }
  0x12   : > { %p1778_p12 = pnand %p1776_p11, %p1773_p10 }
  0x14   : > { %1781 = shalt.err (!%p1778_p12)
}
  0x15   : > { %s1782_s10 = scalar_lea.vmem %s208_s24, 2048  ;;  %p1790_p5 = scmp.lt.s32.totalorder %s208_s24, %s208_s24 }
  0x16   : > { %p1783_p13 = scmp.ne.s32.totalorder %s208_s24, %s1782_s10  ;;  %p1791_p2 = scmp.lt.s32.totalorder %s1782_s10, %s1782_s10 }
  0x18   : > { %p1785_p0 = pnand %p1783_p13, %p1771_p8  ;;  %p1792_p4 = por %p1791_p2, %p1790_p5 }
  0x1a   : > { %p1786_p1 = pneg %p1785_p0 }
  0x1c   : > { %p1793_p3 = pnand %p1792_p4, %p1786_p1 }
  0x1e   : > { %1796 = shalt.err (!%p1793_p3)
}
  0x1f   : > { %s1840_s11 = smov 64   ;;  %s1841_s12 = smov 4  }
  0x20   : > { %1708 = dma.hbm_to_vmem [thread:$0]  (!%p1903_p6), %s2166_s3, 2048, %s208_s24, [#allocation4], %s1840_s11, %s1840_s11, %s1841_s12  }
  0x21   : > { %p2174_p7 = scmp.ne.s32.totalorder %s2172_s25, 0 }
  0x22   : > { %p2175_p9 = scmp.eq.s32.totalorder (!%p2174_p7), %s1889_s22, 0 }
  0x23   : > { %263 = sbr.rel (%p2174_p7) target bundleno = 1469 (0x5bd), region = 44 }
  0x2a   : > { %1828 = dma.done.wait (%p2175_p9), [#allocation4], 2048   ;;  %p2176_p8 = pmov %p2175_p9 }
  0x2b   : > { %p308_p2 = scmp.lt.s32.totalorder %s1889_s22, 1  ;;  %v1842_v0 = vmov 0   ;;  %v1732_v1 = vld [vmem:[#allocation3] sm:$0xff]   ;;  %v1733_v2 = vld [vmem:[#allocation3 + $0x8] sm:$0xff]   ;;  %v1734_v3 = vld [vmem:[#allocation3 + $0x10] sm:$0xff]   ;;  %vm1844_vm0 = vmmov 0  }
  0x2c   : > { %1830 = vsyncadd (%p2176_p8), [#allocation4], 4294965248  ;;  %1730 = vset.pattern.permute.xlu0 %v1842_v0  ;;  %1731 = vset.pattern.permute.xlu1 %v1842_v0  ;;  %v1735_v4 = vld [vmem:[#allocation3 + $0x18] sm:$0xff]   ;;  %v1736_v6 = vld [vmem:[#allocation3 + $0x20] sm:$0xff]   ;;  %p2177_p3 = scmp.ne.s32.totalorder %s1889_s22, 0 }
  0x2d   : > { %s1931_s15 = scalar_select %p308_p2, %s1889_s22, 1  ;;  %1549 = vmatprep.subr.bf16.mxu0 %v1732_v1  ;;  %v1737_v7 = vld [vmem:[#allocation3 + $0x28] sm:$0xff]   ;;  %v1738_v12 = vld [vmem:[#allocation3 + $0x30] sm:$0xff]   ;;  %v1739_v15 = vld [vmem:[#allocation3 + $0x38] sm:$0xff]  }
  0x2e   : > { %1550 = vmatpush3.bf16.msra.mxu0 %v1732_v1  ;;  %v1756_v36 = vld [vmem:[#allocation3 + $0x40] sm:$0xff]   ;;  %v1757_v37 = vld [vmem:[#allocation3 + $0x48] sm:$0xff]   ;;  %v1758_v38 = vld [vmem:[#allocation3 + $0x50] sm:$0xff]  }
  0x2f   : > { %s1471_s16 = sshll.u32 %s1931_s15, 6  ;;  %1551 = vmatprep.subr.bf16.mxu0 %v1733_v2  ;;  %s1472_s20 = sshll.u32 %s1931_s15, 7  ;;  %v1759_v39 = vld [vmem:[#allocation3 + $0x58] sm:$0xff]   ;;  %v1760_v40 = vld [vmem:[#allocation3 + $0x60] sm:$0xff]   ;;  %v1761_v41 = vld [vmem:[#allocation3 + $0x68] sm:$0xff]  }
  0x30   : > { %s1939_s19 = scalar_lea.vmem %s2165_s2, %s1471_s16  ;;  %s1946_s25 = scalar_lea.vmem %s2164_s1, %s1472_s20 }
  0x31   : > { %v1740_v5 = vld [vmem:[%s1939_s19] sm:$0xff]   ;;  %v352_v9 = vld [vmem:[%s1946_s25 + $0x10] sm:$0xff]  ;;  %v351_v10 = vld [vmem:[%s1946_s25 + $0x8] sm:$0xff]  ;;  %s1475_s26 = sshll.u32 %s1931_s15, 4  ;;  %s1980_s8 = scalar_lea.vmem %s2163_s0, %s1471_s16 }
  0x32   : > { %1552 = vmatpush3.bf16.msra.mxu0 %v1733_v2  ;;  %1565 = vmatprep.mubr.bf16.mxu0 %v1740_v5  ;;  %v350_v8 = vld [vmem:[%s1946_s25] sm:$0xff]  ;;  %v353_v11 = vld [vmem:[%s1946_s25 + $0x18] sm:$0xff]  ;;  %v355_v14 = vld [vmem:[%s1946_s25 + $0x28] sm:$0xff]  ;;  %s332_s29 = scalar_lea.vmem %s2168_s5, %s1475_s26  ;;  %s1474_s9 = sshll.u32 %s1931_s15, 3 }
  0x33   : > { %1553 = vmatprep.subr.bf16.mxu0 %v1734_v3  ;;  %593 = vperm.xlu0 %1730, %v350_v8   ;;  %v354_v13 = vld [vmem:[%s1946_s25 + $0x20] sm:$0xff]  ;;  %v356_v16 = vld [vmem:[%s1946_s25 + $0x30] sm:$0xff]  ;;  %v357_v17 = vld [vmem:[%s1946_s25 + $0x38] sm:$0xff]  ;;  %s2107_s12 = scalar_lea.vmem %s2167_s4, %s1474_s9 }
  0x34   : > { %603 = vperm.xlu1 %1731, %v352_v9   ;;  %v1741_v18 = vld [vmem:[%s1939_s19 + $0x8] sm:$0xff]   ;;  %v358_v19 = vld [vmem:[%s1946_s25 + $0x40] sm:$0xff]  ;;  %v1742_v21 = vld [vmem:[%s1939_s19 + $0x10] sm:$0xff]  }
  0x35   : > { %v359_v20 = vld [vmem:[%s1946_s25 + $0x48] sm:$0xff]  ;;  %v360_v22 = vld [vmem:[%s1946_s25 + $0x50] sm:$0xff]  ;;  %v361_v23 = vld [vmem:[%s1946_s25 + $0x58] sm:$0xff] }
  0x36   : > { %1554 = vmatpush3.bf16.msra.mxu0 %v1734_v3  ;;  %v1743_v24 = vld [vmem:[%s1939_s19 + $0x18] sm:$0xff]   ;;  %v362_v25 = vld [vmem:[%s1946_s25 + $0x60] sm:$0xff]  ;;  %v363_v26 = vld [vmem:[%s1946_s25 + $0x68] sm:$0xff] }
  0x37   : > { %1555 = vmatprep.subr.bf16.mxu0 %v1735_v4  ;;  %598 = vperm.xlu0 %1730, %v351_v10   ;;  %v1744_v27 = vld [vmem:[%s1939_s19 + $0x20] sm:$0xff]   ;;  %v364_v28 = vld [vmem:[%s1946_s25 + $0x70] sm:$0xff]  ;;  %v365_v29 = vld [vmem:[%s1946_s25 + $0x78] sm:$0xff] }
  0x38   : > { %608 = vperm.xlu1 %1731, %v353_v11   ;;  %v1745_v30 = vld [vmem:[%s1939_s19 + $0x28] sm:$0xff]   ;;  %v1252_v31 = vld [vmem:[%s332_s29] sm:$0xff]  ;;  %v1746_v33 = vld [vmem:[%s1939_s19 + $0x30] sm:$0xff]  }
  0x39   : > { %v1253_v32 = vld [vmem:[%s332_s29 + $0x8] sm:$0xff]  ;;  %v1747_v34 = vld [vmem:[%s1939_s19 + $0x38] sm:$0xff]   ;;  %v1983_v35 = vld [vmem:[%s1980_s8] sm:$0xff]  }
  0x3a   : > { %1556 = vmatpush3.bf16.msra.mxu0 %v1735_v4  ;;  %1597 = vmatprep.mubr.bf16.mxu1 %v1983_v35 }
  0x3b   : > { %1557 = vmatprep.subr.bf16.mxu0 %v1736_v6  ;;  %613 = vperm.xlu0 %1730, %v354_v13  }
  0x3c   : > { %618 = vperm.xlu1 %1731, %v355_v14  }
  0x3e   : > { %1558 = vmatpush3.bf16.msra.mxu0 %v1736_v6 }
  0x3f   : > { %1559 = vmatprep.subr.bf16.mxu0 %v1737_v7  ;;  %623 = vperm.xlu0 %1730, %v356_v16  }
  0x40   : > { %628 = vperm.xlu1 %1731, %v357_v17  }
  0x42   : > { %1560 = vmatpush3.bf16.msra.mxu0 %v1737_v7 }
  0x43   : > { %1561 = vmatprep.subr.bf16.mxu0 %v1738_v12  ;;  %633 = vperm.xlu0 %1730, %v358_v19  }
  0x44   : > { %638 = vperm.xlu1 %1731, %v359_v20  }
  0x46   : > { %1562 = vmatpush3.bf16.msra.mxu0 %v1738_v12 }
  0x47   : > { %1563 = vmatprep.subr.bf16.mxu0 %v1739_v15  ;;  %643 = vperm.xlu0 %1730, %v360_v22  }
  0x48   : > { %648 = vperm.xlu1 %1731, %v361_v23  }
  0x4a   : > { %1564 = vmatpush3.bf16.msra.mxu0 %v1739_v15 }
  0x4b   : > { %653 = vperm.xlu0 %1730, %v362_v25   ;;  %1613 = vmatprep.subr.bf16.mxu0 %v1756_v36 }
  0x4c   : > { %658 = vperm.xlu1 %1731, %v363_v26  }
  0x4d   : > { %1566 = vmatmul.mubr.bf16.vlgmr.msra.gmra.mrb[0].mxu0 %v1741_v18 }
  0x4e   : > { %1569 = vmatprep.mubr.bf16.mxu0 %v1742_v21  ;;  %1614 = vmatpush3.bf16.msra.mxu0 %v1756_v36  ;;  %v2038_v36 = vld [vmem:[%s1980_s8 + $0x10] sm:$0xff]  }
  0x4f   : > { %663 = vperm.xlu0 %1730, %v364_v28   ;;  %1615 = vmatprep.subr.bf16.mxu0 %v1757_v37 }
  0x50   : > { %668 = vperm.xlu1 %1731, %v365_v29  }
  0x52   : > { %1616 = vmatpush3.bf16.msra.mxu0 %v1757_v37  ;;  %v2043_v37 = vld [vmem:[%s1980_s8 + $0x18] sm:$0xff]  }
  0x53   : > { %1256 = vperm.xlu0 %1730, %v1252_v31   ;;  %1617 = vmatprep.subr.bf16.mxu0 %v1758_v38 }
  0x54   : > { %1261 = vperm.xlu1 %1731, %v1253_v32  }
  0x55   : > { %1570 = vmatmul.mubr.bf16.gmra.mrb[4].mxu0 %v1743_v24 }
  0x56   : > { %1573 = vmatprep.mubr.bf16.mxu0 %v1744_v27  ;;  %1618 = vmatpush3.bf16.msra.mxu0 %v1758_v38  ;;  %v2046_v38 = vld [vmem:[%s1980_s8 + $0x20] sm:$0xff]  }
  0x57   : > { %1619 = vmatprep.subr.bf16.mxu0 %v1759_v39 }
  0x5a   : > { %1620 = vmatpush3.bf16.msra.mxu0 %v1759_v39  ;;  %v2051_v39 = vld [vmem:[%s1980_s8 + $0x28] sm:$0xff]  }
  0x5b   : > { %1621 = vmatprep.subr.bf16.mxu0 %v1760_v40 }
  0x5d   : > { %1574 = vmatmul.mubr.bf16.gmra.mrb[8].mxu0 %v1745_v30 }
  0x5e   : > { %1577 = vmatprep.mubr.bf16.mxu0 %v1746_v33  ;;  %1622 = vmatpush3.bf16.msra.mxu0 %v1760_v40  ;;  %v2054_v40 = vld [vmem:[%s1980_s8 + $0x30] sm:$0xff]  }
  0x5f   : > { %1623 = vmatprep.subr.bf16.mxu0 %v1761_v41 }
  0x62   : > { %1624 = vmatpush3.bf16.msra.mxu0 %v1761_v41  ;;  %v2059_v41 = vld [vmem:[%s1980_s8 + $0x38] sm:$0xff]  }
  0x65   : > { %1578 = vmatmul.mubr.bf16.gmra.mrb[12].mxu0 %v1747_v34  ;;  %v2035_v34 = vld [vmem:[%s1980_s8 + $0x8] sm:$0xff]  }
  0xb2   : > { %v1986_v42 = vpop.permute.xlu0 %593 }
  0xb3   : > { %v1988_v43 = vpop.permute.xlu1 %603 }
  0xb6   : > { %v1990_v44 = vpop.permute.xlu0 %598 }
  0xb7   : > { %v1992_v45 = vpop.permute.xlu1 %608 }
  0xba   : > { %v1994_v46 = vpop.permute.xlu0 %613 }
  0xbb   : > { %v1996_v47 = vpop.permute.xlu1 %618 }
  0xbe   : > { %v1998_v49 = vpop.permute.xlu0 %623 }
  0xbf   : > { %v2000_v51 = vpop.permute.xlu1 %628 }
  0xc2   : > { %v2006_v60 = vpop.permute.xlu0 %633 }
  0xc3   : > { %v2008_v61 = vpop.permute.xlu1 %638 }
  0xc6   : > { %v2014_v6 = vpop.permute.xlu0 %643 }
  0xc7   : > { %v2016_v8 = vpop.permute.xlu1 %648 }
  0xca   : > { %v2018_v13 = vpop.permute.xlu0 %653 }
  0xcb   : > { %v2022_v17 = vpop.permute.xlu1 %658 }
  0xce   : > { %v2026_v23 = vpop.permute.xlu0 %663 }
  0xcf   : > { %v2028_v25 = vpop.permute.xlu1 %668 }
 0x120   : > { %v1567_v48 = vpop.f32.mrb[0].mxu0 }
 0x121   : > { %v528_v50 = vpop.f32.mrb[1].mxu0  ;;  %v673_v53 = vmul.f32 %v1567_v48, %v1988_v43  ;;  %v1762_v48 = vld [vmem:[#allocation3 + $0x70] sm:$0xff]  }
 0x122   : > { %v1568_v52 = vpop.f32.mrb[2].mxu0  ;;  %v671_v56 = vmul.f32 %v1986_v42, %v528_v50  ;;  %1625 = vmatprep.subr.bf16.mxu0 %v1762_v48  ;;  %v1763_v50 = vld [vmem:[#allocation3 + $0x78] sm:$0xff]  }
 0x123   : > { %v674_v54 = vmul.f32 %v1568_v52, %v1992_v45  ;;  %v531_v55 = vpop.f32.mrb[3].mxu0  ;;  %1626 = vmatpush3.bf16.msra.mxu0 %v1762_v48 }
 0x124   : > { %v672_v57 = vmul.f32 %v1990_v44, %v531_v55  ;;  %1627 = vmatprep.subr.bf16.mxu0 %v1763_v50 }
 0x125   : > { %v688_v58 = vpack.c.bf16 %v674_v54, %v673_v53 }
 0x126   : > { %v687_v59 = vpack.c.bf16 %v672_v57, %v671_v56 }
 0x127   : > { %1628 = vmatpush3.bf16.msra.mxu0 %v1763_v50 }
 0x128   : > { %v1571_v62 = vpop.f32.mrb[4].mxu0  ;;  %1581 = vmatprep.subr.bf16.mxu1 %v687_v59 }
 0x129   : > { %v544_v63 = vpop.f32.mrb[5].mxu0  ;;  %1582 = vmatpush3.bf16.msra.mxu1 %v687_v59  ;;  %v677_v1 = vmul.f32 %v1571_v62, %v1998_v49 }
 0x12a   : > { %v1572_v0 = vpop.f32.mrb[6].mxu0  ;;  %1583 = vmatprep.subr.bf16.mxu1 %v688_v58  ;;  %v675_v4 = vmul.f32 %v1994_v46, %v544_v63 }
 0x12b   : > { %v678_v2 = vmul.f32 %v1572_v0, %v2000_v51  ;;  %v547_v3 = vpop.f32.mrb[7].mxu0 }
 0x12c   : > { %v676_v5 = vmul.f32 %v1996_v47, %v547_v3 }
 0x12d   : > { %v690_v7 = vpack.c.bf16 %v678_v2, %v677_v1  ;;  %1584 = vmatpush3.bf16.msra.mxu1 %v688_v58 }
 0x12e   : > { %v689_v9 = vpack.c.bf16 %v676_v5, %v675_v4 }
 0x130   : > { %v1575_v10 = vpop.f32.mrb[8].mxu0  ;;  %1585 = vmatprep.subr.bf16.mxu1 %v689_v9 }
 0x131   : > { %v560_v11 = vpop.f32.mrb[9].mxu0  ;;  %1586 = vmatpush3.bf16.msra.mxu1 %v689_v9  ;;  %v681_v14 = vmul.f32 %v1575_v10, %v2014_v6 }
 0x132   : > { %v1576_v12 = vpop.f32.mrb[10].mxu0  ;;  %1587 = vmatprep.subr.bf16.mxu1 %v690_v7  ;;  %v679_v18 = vmul.f32 %v2006_v60, %v560_v11 }
 0x133   : > { %v682_v15 = vmul.f32 %v1576_v12, %v2016_v8  ;;  %v563_v16 = vpop.f32.mrb[11].mxu0 }
 0x134   : > { %v680_v19 = vmul.f32 %v2008_v61, %v563_v16 }
 0x135   : > { %v692_v20 = vpack.c.bf16 %v682_v15, %v681_v14  ;;  %1588 = vmatpush3.bf16.msra.mxu1 %v690_v7 }
 0x136   : > { %v691_v21 = vpack.c.bf16 %v680_v19, %v679_v18 }
 0x138   : > { %v1579_v22 = vpop.f32.mrb[12].mxu0  ;;  %1589 = vmatprep.subr.bf16.mxu1 %v691_v21 }
 0x139   : > { %v576_v24 = vpop.f32.mrb[13].mxu0  ;;  %1590 = vmatpush3.bf16.msra.mxu1 %v691_v21  ;;  %v685_v27 = vmul.f32 %v1579_v22, %v2026_v23 }
 0x13a   : > { %v1580_v26 = vpop.f32.mrb[14].mxu0  ;;  %1591 = vmatprep.subr.bf16.mxu1 %v692_v20  ;;  %v683_v30 = vmul.f32 %v2018_v13, %v576_v24 }
 0x13b   : > { %v686_v28 = vmul.f32 %v1580_v26, %v2028_v25  ;;  %v579_v29 = vpop.f32.mrb[15].mxu0 }
 0x13c   : > { %v684_v31 = vmul.f32 %v2022_v17, %v579_v29 }
 0x13d   : > { %v694_v32 = vpack.c.bf16 %v686_v28, %v685_v27  ;;  %1592 = vmatpush3.bf16.msra.mxu1 %v692_v20 }
 0x13e   : > { %v693_v33 = vpack.c.bf16 %v684_v31, %v683_v30 }
 0x140   : > { %1593 = vmatprep.subr.bf16.mxu1 %v693_v33 }
 0x141   : > { %1594 = vmatpush3.bf16.msra.mxu1 %v693_v33 }
 0x142   : > { %1595 = vmatprep.subr.bf16.mxu1 %v694_v32 }
 0x145   : > { %1596 = vmatpush3.bf16.msra.mxu1 %v694_v32 }
 0x148   : > { %1598 = vmatmul.mubr.bf16.vlgmr.msra.gmra.mrb[0].mxu1 %v2035_v34 }
 0x149   : > { %1601 = vmatprep.mubr.bf16.mxu1 %v2038_v36 }
 0x150   : > { %1602 = vmatmul.mubr.bf16.gmra.mrb[4].mxu1 %v2043_v37 }
 0x151   : > { %1605 = vmatprep.mubr.bf16.mxu1 %v2046_v38 }
 0x158   : > { %1606 = vmatmul.mubr.bf16.gmra.mrb[8].mxu1 %v2051_v39 }
 0x159   : > { %1609 = vmatprep.mubr.bf16.mxu1 %v2054_v40 }
 0x160   : > { %1610 = vmatmul.mubr.bf16.gmra.mrb[12].mxu1 %v2059_v41 }
 0x161   : > { %1661 = vmatprep.mubr.bf16.mxu1 %v1983_v35 }
 0x21b   : > { %v1599_v52 = vpop.f32.mrb[0].mxu1 }
 0x21c   : > { %v842_v53 = vmul.f32 %v1599_v52, %v1988_v43  ;;  %v777_v54 = vpop.f32.mrb[1].mxu1 }
 0x21d   : > { %v840_v55 = vmul.f32 %v777_v54, %v1986_v42  ;;  %v1600_v56 = vpop.f32.mrb[2].mxu1 }
 0x21e   : > { %v843_v57 = vmul.f32 %v1600_v56, %v1992_v45  ;;  %v780_v58 = vpop.f32.mrb[3].mxu1  ;;  %v858_v62 = vmax.f32 %v842_v53, 0.0 }
 0x21f   : > { %v841_v59 = vmul.f32 %v780_v58, %v1990_v44  ;;  %v856_v63 = vmax.f32 %v840_v55, 0.0 }
 0x220   : > { %v859_v35 = vmax.f32 %v843_v57, 0.0 }
 0x221   : > { %v857_v0 = vmax.f32 %v841_v59, 0.0 }
 0x222   : > { %v873_v1 = vpack.c.bf16 %v859_v35, %v858_v62 }
 0x223   : > { %v872_v2 = vpack.c.bf16 %v857_v0, %v856_v63  ;;  %v1603_v3 = vpop.f32.mrb[4].mxu1 }
 0x224   : > { %v846_v4 = vmul.f32 %v1603_v3, %v1998_v49  ;;  %v793_v5 = vpop.f32.mrb[5].mxu1 }
 0x225   : > { %v844_v7 = vmul.f32 %v793_v5, %v1994_v46  ;;  %v1604_v9 = vpop.f32.mrb[6].mxu1  ;;  %1629 = vmatprep.mubr.bf16.mxu0 %v872_v2 }
 0x226   : > { %v847_v10 = vmul.f32 %v1604_v9, %v2000_v51  ;;  %v796_v11 = vpop.f32.mrb[7].mxu1  ;;  %1630 = vmatmul.mubr.bf16.vlgmr.msra.gmra.mrb[16].mxu0 %v873_v1  ;;  %v862_v14 = vmax.f32 %v846_v4, 0.0 }
 0x227   : > { %v845_v12 = vmul.f32 %v796_v11, %v1996_v47  ;;  %v860_v16 = vmax.f32 %v844_v7, 0.0 }
 0x228   : > { %v863_v15 = vmax.f32 %v847_v10, 0.0 }
 0x229   : > { %v861_v18 = vmax.f32 %v845_v12, 0.0 }
 0x22a   : > { %v875_v19 = vpack.c.bf16 %v863_v15, %v862_v14 }
 0x22b   : > { %v874_v20 = vpack.c.bf16 %v861_v18, %v860_v16  ;;  %v1607_v21 = vpop.f32.mrb[8].mxu1 }
 0x22c   : > { %v850_v22 = vmul.f32 %v1607_v21, %v2014_v6  ;;  %v809_v24 = vpop.f32.mrb[9].mxu1 }
 0x22d   : > { %v848_v26 = vmul.f32 %v809_v24, %v2006_v60  ;;  %v1608_v27 = vpop.f32.mrb[10].mxu1  ;;  %1633 = vmatprep.mubr.bf16.mxu0 %v874_v20 }
 0x22e   : > { %v851_v28 = vmul.f32 %v1608_v27, %v2016_v8  ;;  %v812_v29 = vpop.f32.mrb[11].mxu1  ;;  %1634 = vmatmul.mubr.bf16.gmra.mrb[20].mxu0 %v875_v19  ;;  %v866_v31 = vmax.f32 %v850_v22, 0.0 }
 0x22f   : > { %v849_v30 = vmul.f32 %v812_v29, %v2008_v61  ;;  %v864_v33 = vmax.f32 %v848_v26, 0.0 }
 0x230   : > { %v867_v32 = vmax.f32 %v851_v28, 0.0 }
 0x231   : > { %v865_v48 = vmax.f32 %v849_v30, 0.0 }
 0x232   : > { %v877_v50 = vpack.c.bf16 %v867_v32, %v866_v31 }
 0x233   : > { %v876_v52 = vpack.c.bf16 %v865_v48, %v864_v33  ;;  %v1611_v53 = vpop.f32.mrb[12].mxu1 }
 0x234   : > { %v854_v54 = vmul.f32 %v1611_v53, %v2026_v23  ;;  %v825_v55 = vpop.f32.mrb[13].mxu1 }
 0x235   : > { %v852_v56 = vmul.f32 %v825_v55, %v2018_v13  ;;  %v1612_v57 = vpop.f32.mrb[14].mxu1  ;;  %1637 = vmatprep.mubr.bf16.mxu0 %v876_v52 }
 0x236   : > { %v855_v58 = vmul.f32 %v1612_v57, %v2028_v25  ;;  %v828_v59 = vpop.f32.mrb[15].mxu1  ;;  %1638 = vmatmul.mubr.bf16.gmra.mrb[24].mxu0 %v877_v50  ;;  %v870_v35 = vmax.f32 %v854_v54, 0.0 }
 0x237   : > { %v853_v62 = vmul.f32 %v828_v59, %v2022_v17  ;;  %v868_v0 = vmax.f32 %v852_v56, 0.0 }
 0x238   : > { %v871_v63 = vmax.f32 %v855_v58, 0.0 }
 0x239   : > { %v869_v1 = vmax.f32 %v853_v62, 0.0 }
 0x23a   : > { %v879_v2 = vpack.c.bf16 %v871_v63, %v870_v35 }
 0x23b   : > { %v878_v3 = vpack.c.bf16 %v869_v1, %v868_v0 }
 0x23d   : > { %1641 = vmatprep.mubr.bf16.mxu0 %v878_v3  ;;  %v1843_v3 = vmov 0.0  }
 0x23e   : > { %1642 = vmatmul.mubr.bf16.gmra.mrb[28].mxu0 %v879_v2  ;;  %1677 = vmatprep.subr.bf16.mxu0 %v1843_v3 }
 0x23f   : > { %1693 = vmatprep.mubr.msk.bf16.mxu0 %vm1844_vm0, %v1843_v3 }
 0x2f9   : > { %v1631_v4 = vpop.f32.mrb[16].mxu0 }
 0x2fa   : > { %v979_v5 = vpop.f32.mrb[17].mxu0  ;;  %v1044_v9 = vmul.f32 %v1631_v4, %v1988_v43 }
 0x2fb   : > { %v1632_v7 = vpop.f32.mrb[18].mxu0  ;;  %v1042_v12 = vmul.f32 %v979_v5, %v1986_v42 }
 0x2fc   : > { %v1045_v10 = vmul.f32 %v1632_v7, %v1992_v45  ;;  %v982_v11 = vpop.f32.mrb[19].mxu0 }
 0x2fd   : > { %v1043_v14 = vmul.f32 %v982_v11, %v1990_v44 }
 0x2fe   : > { %v1059_v15 = vpack.c.bf16 %v1045_v10, %v1044_v9 }
 0x2ff   : > { %v1058_v16 = vpack.c.bf16 %v1043_v14, %v1042_v12 }
 0x301   : > { %v1635_v18 = vpop.f32.mrb[20].mxu0  ;;  %1645 = vmatprep.subr.bf16.mxu1 %v1058_v16 }
 0x302   : > { %v995_v19 = vpop.f32.mrb[21].mxu0  ;;  %1646 = vmatpush3.bf16.msra.mxu1 %v1058_v16  ;;  %v1048_v21 = vmul.f32 %v1635_v18, %v1998_v49 }
 0x303   : > { %v1636_v20 = vpop.f32.mrb[22].mxu0  ;;  %1647 = vmatprep.subr.bf16.mxu1 %v1059_v15  ;;  %v1046_v26 = vmul.f32 %v995_v19, %v1994_v46 }
 0x304   : > { %v1049_v22 = vmul.f32 %v1636_v20, %v2000_v51  ;;  %v998_v24 = vpop.f32.mrb[23].mxu0 }
 0x305   : > { %v1047_v27 = vmul.f32 %v998_v24, %v1996_v47 }
 0x306   : > { %v1061_v28 = vpack.c.bf16 %v1049_v22, %v1048_v21  ;;  %1648 = vmatpush3.bf16.msra.mxu1 %v1059_v15 }
 0x307   : > { %v1060_v29 = vpack.c.bf16 %v1047_v27, %v1046_v26 }
 0x309   : > { %v1639_v30 = vpop.f32.mrb[24].mxu0  ;;  %1649 = vmatprep.subr.bf16.mxu1 %v1060_v29 }
 0x30a   : > { %v1011_v31 = vpop.f32.mrb[25].mxu0  ;;  %1650 = vmatpush3.bf16.msra.mxu1 %v1060_v29  ;;  %v1052_v33 = vmul.f32 %v1639_v30, %v2014_v6 }
 0x30b   : > { %v1640_v32 = vpop.f32.mrb[26].mxu0  ;;  %1651 = vmatprep.subr.bf16.mxu1 %v1061_v28  ;;  %v1050_v52 = vmul.f32 %v1011_v31, %v2006_v60 }
 0x30c   : > { %v1053_v48 = vmul.f32 %v1640_v32, %v2016_v8  ;;  %v1014_v50 = vpop.f32.mrb[27].mxu0 }
 0x30d   : > { %v1051_v53 = vmul.f32 %v1014_v50, %v2008_v61 }
 0x30e   : > { %v1063_v54 = vpack.c.bf16 %v1053_v48, %v1052_v33  ;;  %1652 = vmatpush3.bf16.msra.mxu1 %v1061_v28 }
 0x30f   : > { %v1062_v55 = vpack.c.bf16 %v1051_v53, %v1050_v52 }
 0x311   : > { %v1643_v56 = vpop.f32.mrb[28].mxu0  ;;  %1653 = vmatprep.subr.bf16.mxu1 %v1062_v55 }
 0x312   : > { %v1027_v57 = vpop.f32.mrb[29].mxu0  ;;  %1654 = vmatpush3.bf16.msra.mxu1 %v1062_v55  ;;  %v1056_v59 = vmul.f32 %v1643_v56, %v2026_v23 }
 0x313   : > { %v1644_v58 = vpop.f32.mrb[30].mxu0  ;;  %1655 = vmatprep.subr.bf16.mxu1 %v1063_v54  ;;  %v1054_v63 = vmul.f32 %v1027_v57, %v2018_v13 }
 0x314   : > { %v1057_v62 = vmul.f32 %v1644_v58, %v2028_v25  ;;  %v1030_v35 = vpop.f32.mrb[31].mxu0 }
 0x315   : > { %v1055_v0 = vmul.f32 %v1030_v35, %v2022_v17 }
 0x316   : > { %v1065_v1 = vpack.c.bf16 %v1057_v62, %v1056_v59  ;;  %1656 = vmatpush3.bf16.msra.mxu1 %v1063_v54 }
 0x317   : > { %v1064_v2 = vpack.c.bf16 %v1055_v0, %v1054_v63 }
 0x319   : > { %1657 = vmatprep.subr.bf16.mxu1 %v1064_v2 }
 0x31a   : > { %1658 = vmatpush3.bf16.msra.mxu1 %v1064_v2 }
 0x31b   : > { %1659 = vmatprep.subr.bf16.mxu1 %v1065_v1 }
 0x31e   : > { %1660 = vmatpush3.bf16.msra.mxu1 %v1065_v1 }
 0x321   : > { %1662 = vmatmul.mubr.bf16.vlgmr.msra.gmra.mrb[16].mxu1 %v2035_v34 }
 0x322   : > { %1665 = vmatprep.mubr.bf16.mxu1 %v2038_v36 }
 0x329   : > { %1666 = vmatmul.mubr.bf16.gmra.mrb[20].mxu1 %v2043_v37 }
 0x32a   : > { %1669 = vmatprep.mubr.bf16.mxu1 %v2046_v38 }
 0x331   : > { %1670 = vmatmul.mubr.bf16.gmra.mrb[24].mxu1 %v2051_v39 }
 0x332   : > { %1673 = vmatprep.mubr.bf16.mxu1 %v2054_v40 }
 0x339   : > { %1674 = vmatmul.mubr.bf16.gmra.mrb[28].mxu1 %v2059_v41 }
 0x3f4   : > { %v1663_v34 = vpop.f32.mrb[16].mxu1 }
 0x3f5   : > { %v1165_v36 = vmul.f32 %v1663_v34, %v1988_v43  ;;  %v1100_v37 = vpop.f32.mrb[17].mxu1 }
 0x3f6   : > { %v1163_v38 = vmul.f32 %v1100_v37, %v1986_v42  ;;  %v1664_v39 = vpop.f32.mrb[18].mxu1 }
 0x3f7   : > { %v1166_v40 = vmul.f32 %v1664_v39, %v1992_v45  ;;  %v1103_v41 = vpop.f32.mrb[19].mxu1  ;;  %v1181_v5 = vmax.f32 %v1165_v36, 0.0 }
 0x3f8   : > { %v1164_v4 = vmul.f32 %v1103_v41, %v1990_v44  ;;  %v1179_v9 = vmax.f32 %v1163_v38, 0.0 }
 0x3f9   : > { %v1182_v7 = vmax.f32 %v1166_v40, 0.0 }
 0x3fa   : > { %v1180_v10 = vmax.f32 %v1164_v4, 0.0 }
 0x3fb   : > { %v1196_v11 = vpack.c.bf16 %v1182_v7, %v1181_v5 }
 0x3fc   : > { %v1195_v12 = vpack.c.bf16 %v1180_v10, %v1179_v9  ;;  %v1667_v14 = vpop.f32.mrb[20].mxu1 }
 0x3fd   : > { %v1169_v15 = vmul.f32 %v1667_v14, %v1998_v49  ;;  %v1116_v16 = vpop.f32.mrb[21].mxu1 }
 0x3fe   : > { %v1167_v43 = vmul.f32 %v1116_v16, %v1994_v46  ;;  %v1668_v18 = vpop.f32.mrb[22].mxu1  ;;  %1678 = vmatpush3.bf16.msra.mxu0 %v1195_v12 }
 0x3ff   : > { %v1170_v42 = vmul.f32 %v1668_v18, %v2000_v51  ;;  %v1119_v45 = vpop.f32.mrb[23].mxu1  ;;  %1679 = vmatprep.subr.bf16.mxu0 %v1843_v3  ;;  %v1185_v19 = vmax.f32 %v1169_v15, 0.0 }
 0x400   : > { %v1168_v44 = vmul.f32 %v1119_v45, %v1996_v47  ;;  %v1183_v21 = vmax.f32 %v1167_v43, 0.0 }
 0x401   : > { %v1186_v20 = vmax.f32 %v1170_v42, 0.0 }
 0x402   : > { %v1184_v22 = vmax.f32 %v1168_v44, 0.0  ;;  %1680 = vmatpush3.bf16.msra.mxu0 %v1196_v11 }
 0x403   : > { %v1198_v24 = vpack.c.bf16 %v1186_v20, %v1185_v19  ;;  %1681 = vmatprep.subr.bf16.mxu0 %v1843_v3 }
 0x404   : > { %v1197_v49 = vpack.c.bf16 %v1184_v22, %v1183_v21  ;;  %v1671_v26 = vpop.f32.mrb[24].mxu1 }
 0x405   : > { %v1173_v46 = vmul.f32 %v1671_v26, %v2014_v6  ;;  %v1132_v27 = vpop.f32.mrb[25].mxu1 }
 0x406   : > { %v1171_v51 = vmul.f32 %v1132_v27, %v2006_v60  ;;  %v1672_v28 = vpop.f32.mrb[26].mxu1  ;;  %1682 = vmatpush3.bf16.msra.mxu0 %v1197_v49 }
 0x407   : > { %v1174_v29 = vmul.f32 %v1672_v28, %v2016_v8  ;;  %v1135_v47 = vpop.f32.mrb[27].mxu1  ;;  %1683 = vmatprep.subr.bf16.mxu0 %v1843_v3  ;;  %v1189_v31 = vmax.f32 %v1173_v46, 0.0 }
 0x408   : > { %v1172_v30 = vmul.f32 %v1135_v47, %v2008_v61  ;;  %v1187_v33 = vmax.f32 %v1171_v51, 0.0 }
 0x409   : > { %v1190_v32 = vmax.f32 %v1174_v29, 0.0 }
 0x40a   : > { %v1188_v48 = vmax.f32 %v1172_v30, 0.0  ;;  %1684 = vmatpush3.bf16.msra.mxu0 %v1198_v24 }
 0x40b   : > { %v1200_v50 = vpack.c.bf16 %v1190_v32, %v1189_v31  ;;  %1685 = vmatprep.subr.bf16.mxu0 %v1843_v3 }
 0x40c   : > { %v1199_v6 = vpack.c.bf16 %v1188_v48, %v1187_v33  ;;  %v1675_v52 = vpop.f32.mrb[28].mxu1 }
 0x40d   : > { %v1177_v60 = vmul.f32 %v1675_v52, %v2026_v23  ;;  %v1148_v53 = vpop.f32.mrb[29].mxu1 }
 0x40e   : > { %v1175_v8 = vmul.f32 %v1148_v53, %v2018_v13  ;;  %v1676_v54 = vpop.f32.mrb[30].mxu1  ;;  %1686 = vmatpush3.bf16.msra.mxu0 %v1199_v6  ;;  %v1764_v13 = vld [vmem:[%s2107_s12] sm:$0xff]  }
 0x40f   : > { %v1178_v61 = vmul.f32 %v1676_v54, %v2028_v25  ;;  %v1151_v55 = vpop.f32.mrb[31].mxu1  ;;  %1687 = vmatprep.subr.bf16.mxu0 %v1843_v3  ;;  %v1193_v57 = vmax.f32 %v1177_v60, 0.0  ;;  %v1257_v25 = vpop.permute.xlu0 %1256 }
 0x410   : > { %v1176_v56 = vmul.f32 %v1151_v55, %v2022_v17  ;;  %v1191_v59 = vmax.f32 %v1175_v8, 0.0  ;;  %v1262_v17 = vpop.permute.xlu1 %1261 }
 0x411   : > { %v1194_v58 = vmax.f32 %v1178_v61, 0.0 }
 0x412   : > { %v1192_v62 = vmax.f32 %v1176_v56, 0.0  ;;  %1688 = vmatpush3.bf16.msra.mxu0 %v1200_v50 }
 0x413   : > { %v1202_v35 = vpack.c.bf16 %v1194_v58, %v1193_v57  ;;  %1689 = vmatprep.subr.bf16.mxu0 %v1843_v3 }
 0x414   : > { %v1201_v23 = vpack.c.bf16 %v1192_v62, %v1191_v59 }
 0x416   : > { %1690 = vmatpush3.bf16.msra.mxu0 %v1201_v23 }
 0x417   : > { %1691 = vmatprep.subr.bf16.mxu0 %v1843_v3 }
 0x41a   : > { %1692 = vmatpush3.bf16.msra.mxu0 %v1202_v35 }
 0x41d   : > { %1694 = vmatmul.mubr.bf16.vlgmr.msra.gmra.mrb[32].mxu0 %v1764_v13 }
 0x4ed   : > { %1269 = sbr.rel (%p2177_p3) target bundleno = 1270 (0x4f6), region = 52 }
 0x4f0   : > { %v1245_v63 = vpop.f32.mrb[32].mxu0 }
 0x4f1   : > { %v1264_v0 = vmul.f32 %v1257_v25, %v1245_v63  ;;  %v1695_v1 = vpop.f32.mrb[33].mxu0 }
 0x4f2   : > { %v1248_v2 = vpop.f32.mrb[34].mxu0 }
 0x4f3   : > { %v1265_v34 = vmul.f32 %v1262_v17, %v1248_v2  ;;  %v1696_v36 = vpop.f32.mrb[35].mxu0  ;;  %1270 = vst [vmem:[#allocation2] sm:$0xff] (!%p2177_p3), %v1264_v0 }
 0x4f5   : > { %1271 = vst [vmem:[#allocation2 + $0x8] sm:$0xff] %v1265_v34 }
 0x4f6 PF: > { %p1466_p4 = scmp.ne.s32.totalorder %s1889_s22, 1 }
 0x4f7   : > { %v1290_v3 = vmul.f32 (!%p1466_p4), %v1264_v0, %v1264_v0  ;;  %v1291_v40 = vmul.f32 (!%p1466_p4), %v1265_v34, %v1265_v34 }
 0x4f8   : > { %1275 = sbr.rel (%p1466_p4) target bundleno = 1443 (0x5a3), region = 56 }
 0x4f9   : > { %1292 = vadd.xlane.f32.xlu1 (!%p1466_p4), %v1290_v3 }
 0x4fc   : > { %v1276_v37 = vld [vmem:[#allocation2] sm:$0xff] (!%p1466_p4)  ;;  %v1277_v38 = vld [vmem:[#allocation2 + $0x8] sm:$0xff] (!%p1466_p4) }
 0x4fd   : > { %v1284_v39 = vmul.f32 (!%p1466_p4), %v1276_v37, %v1276_v37  ;;  %v1285_v41 = vmul.f32 (!%p1466_p4), %v1277_v38, %v1277_v38  ;;  %1294 = vadd.xlane.f32.xlu1 (!%p1466_p4), %v1291_v40  ;;  %v1279_v4 = vmul.f32 (!%p1466_p4), %v1277_v38, %v1265_v34  ;;  %v1278_v5 = vmul.f32 (!%p1466_p4), %v1276_v37, %v1264_v0 }
 0x4ff   : > { %1286 = vadd.xlane.f32.xlu0 %v1284_v39 }
 0x501   : > { %1282 = vadd.xlane.f32.xlu1 %v1279_v4 }
 0x503   : > { %1288 = vadd.xlane.f32.xlu0 %v1285_v41 }
 0x507   : > { %1280 = vadd.xlane.f32.xlu0 %v1278_v5 }
 0x586   : > { %v1293_v7 = vpop.xlane.xlu1 %1292 }
 0x587   : > { %v1298_v9 = vmax.f32 %v1293_v7, 1e-16 }
 0x58a   : > { %v1295_v14 = vpop.xlane.xlu1 %1294 }
 0x58b   : > { %v1299_v15 = vmax.f32 %v1295_v14, 1e-16 }
 0x58c   : > { %v1287_v10 = vpop.xlane.xlu0 %1286 }
 0x58d   : > { %v1296_v11 = vmax.f32 %v1287_v10, 1e-16 }
 0x58e   : > { %v1283_v19 = vpop.xlane.xlu1 %1282 }
 0x58f   : > { %v1300_v12 = vmul.f32 %v1298_v9, %v1296_v11 }
 0x590   : > { %v1289_v16 = vpop.xlane.xlu0 %1288 }
 0x591   : > { %1765 = vrsqrt.f32 %v1300_v12  ;;  %v1297_v43 = vmax.f32 %v1289_v16, 1e-16 }
 0x593   : > { %v1301_v18 = vmul.f32 %v1299_v15, %v1297_v43 }
 0x594   : > { %v1281_v42 = vpop.xlane.xlu0 %1280 }
 0x595   : > { %1767 = vrsqrt.f32 %v1301_v18 }
 0x59b   : > { %v1766_v45 = vpop.eup %1765 }
 0x59c   : > { %v1304_v44 = vmul.f32 %v1766_v45, %v1281_v42 }
 0x59e   : > { %1306 = vst [vmem:[#allocation6] sm:$0xff] %v1304_v44 }
 0x59f   : > { %v1768_v20 = vpop.eup %1767 }
 0x5a0   : > { %v1305_v21 = vmul.f32 %v1768_v20, %v1283_v19 }
 0x5a2   : > { %1307 = vst [vmem:[#allocation6 + $0x8] sm:$0xff] %v1305_v21 }
 0x5a3 PF: > { %p1711_p6 = scmp.eq.s32.totalorder %s1889_s22, 1  ;;  %s1845_s13 = smov [#allocation6]  }
 0x5a4   : > { %s1314_s14 = sshll.u32 %s1845_s13, 4  ;;  %s1315_s14 = int_to_ptr.vmem [resolvable:$true] %s1314_s14 }
 0x5a5   : > { %s1797_s15 = scalar_lea.vmem %s1315_s14, 256  ;;  %p1804_p13 = scmp.lt.s32.totalorder %s1315_s14, %s1315_s14 }
 0x5a6   : > { %p1798_p10 = scmp.ne.s32.totalorder %s1315_s14, %s1797_s15  ;;  %p1805_p0 = scmp.lt.s32.totalorder %s1797_s15, %s1797_s15 }
 0x5a8   : > { %p1799_p11 = pnand %p1798_p10, %p1711_p6  ;;  %p1806_p1 = por %p1805_p0, %p1804_p13 }
 0x5aa   : > { %p1800_p12 = pneg %p1799_p11 }
 0x5ac   : > { %p1807_p5 = pnand %p1806_p1, %p1800_p12 }
 0x5ae   : > { %1810 = shalt.err (!%p1807_p5)
}
 0x5af   : > { %s1811_s18 = scalar_lea.hbm %s2169_s6, 256 }
 0x5b0   : > { %p1812_p7 = scmp.ne.s32.totalorder %s2169_s6, %s1811_s18  ;;  %p1817_p2 = scmp.lt.u32.totalorder %s1811_s18, %s2169_s6 }
 0x5b2   : > { %p1813_p9 = pnand %p1812_p7, %p1711_p6 }
 0x5b4   : > { %p1814_p8 = pneg %p1813_p9 }
 0x5b6   : > { %p1819_p3 = pnand %p1817_p2, %p1814_p8 }
 0x5b8   : > { %1822 = shalt.err (!%p1819_p3)
}
 0x5b9   : > { %s1846_s25 = smov 128   ;;  %s1847_s26 = smov 8  }
 0x5ba   : > { %1702 = dma.vmem_to_hbm [thread:$0]  (%p1711_p6), %s1315_s14, 256, %s2169_s6, [#allocation5], %s1846_s25, %s1846_s25, %s1847_s26  }
 0x5bb   : > { %1832 = dma.done.wait (%p1711_p6), [#allocation5], 256  }
 0x5bc   : > { %1834 = vsyncadd (%p1711_p6), [#allocation5], 4294967040 }
 0x5bd PF: > { %s18_s21 = sadd.s32 1, %s1837_s21  }
 0x5be   : > { %p15_p4 = scmp.ge.s32.totalorder %s18_s21, 4  }
 0x5c0   :  { %17 = sbr.rel (!%p15_p4) target bundleno = 2 (0x2), region = 97 }
 0x5c7   :  { %1330 = vsyncpa [#allocation4], 1 }
 0x5c8   :  { %1332 = vsyncpa [#allocation4 + $0x1], 1 }
 0x5c9   :  { %1333 = vsyncpa [#allocation5], 1 }
 0x5ca   :  { %1335 = vsyncpa [#allocation5 + $0x1], 1 }

</bundles_post_ra>
